<compile_context>
chip_gen: v5e
topology: v5e:2x2
jax: 0.10.0
libtpu: 0.0.40
codegen_flags: <defaults>
</compile_context>

<pallas_src>
import functools

import jax
import jax.numpy as jnp
from jax import lax
from jax.experimental import pallas as pl
from jax.experimental.pallas import tpu as pltpu


def _round_up(x, m):
    return ((x + m - 1) // m) * m


# ---------------------------------------------------------------------------
# Pallas kernel: fused actor+critic MLP forward for one batch tile.
# ---------------------------------------------------------------------------
def _actor_critic_kernel(x_ref, w_ref, b_ref, out_ref, *, s_pad, hpad, n_act):
    x = x_ref[...].astype(jnp.bfloat16)               # [BT, S_pad] -> bf16 for MXU

    # Static, 16-sublane-aligned views into the packed (bf16) weight slab.
    w1 = w_ref[0:s_pad, :]                            # [S_pad, HPAD] actor|critic concat
    w2 = w_ref[s_pad:s_pad + hpad, :]                 # [HPAD, HPAD]  block-diagonal
    w3 = w_ref[s_pad + hpad:s_pad + 2 * hpad, :]      # [HPAD, HPAD]  block-diagonal
    b1 = b_ref[0:1, :]                                # [1, HPAD] f32
    b2 = b_ref[1:2, :]
    b3 = b_ref[2:3, :]

    # 3 fused matmuls (bf16 operands, f32 accumulation).  Actor occupies hidden
    # lanes 0..H-1, critic lanes H..2H-1; zero-padded lanes stay exactly zero.
    h = jnp.tanh(jnp.dot(x, w1, preferred_element_type=jnp.float32) + b1)
    h = jnp.tanh(jnp.dot(h.astype(jnp.bfloat16), w2,
                         preferred_element_type=jnp.float32) + b2)
    raw = jnp.dot(h.astype(jnp.bfloat16), w3,
                  preferred_element_type=jnp.float32) + b3      # [BT, HPAD]
    # raw: cols 0..A-1 = actor logits, col A = critic value, cols A+1.. = 0

    lane = lax.broadcasted_iota(jnp.int32, raw.shape, 1)
    is_actor = lane < n_act
    logits = jnp.where(is_actor, raw, -1e30)          # mask non-actor lanes
    m = jnp.max(logits, axis=-1, keepdims=True)
    shifted = logits - m
    e = jnp.exp(shifted)
    denom = jnp.sum(e, axis=-1, keepdims=True)
    probs = e / denom                                 # exact normalization
    log_probs = shifted - jnp.log(denom)
    entropy = -jnp.sum(jnp.where(is_actor, probs * log_probs, 0.0),
                       axis=-1, keepdims=True)        # [BT, 1]

    # Single lane-dense output slab: [ probs | value | entropy | zeros ].
    out = jnp.where(is_actor, probs, 0.0)
    out = jnp.where(lane == n_act, raw, out)
    out = jnp.where(lane == n_act + 1, entropy, out)
    out_ref[...] = out


# ---------------------------------------------------------------------------
# Chip-aware batch tiling
# ---------------------------------------------------------------------------
def _num_tensorcores():
    try:
        kind = jax.devices()[0].device_kind.lower()
    except Exception:
        return 1
    # 1 TensorCore per chip: v5e / v6e.  2 TCs: v4 / v5p (megacore), v7x.
    if ("v5e" in kind or "v5 lite" in kind or "v5lite" in kind
            or "v6e" in kind or "v6 lite" in kind or "v6lite" in kind):
        return 1
    if "v4" in kind or "v5p" in kind or "7" in kind:
        return 2
    return 1


def _choose_tiling(batch, num_tc, max_tile=512):
    """One batch tile per TensorCore; cap each tile at max_tile rows."""
    b8 = _round_up(batch, 8)
    n_tiles = max(num_tc, -(-b8 // max_tile))
    n_tiles = _round_up(n_tiles, num_tc)
    bt = _round_up(-(-b8 // n_tiles), 8)
    return bt, bt * n_tiles


# ---------------------------------------------------------------------------
# Wrapper: pads/tiles batch, runs one pallas_call, returns the output slab.
# ---------------------------------------------------------------------------
@functools.partial(jax.jit, static_argnames=("action_dim",))
def _forward_slab(state, w_packed, b_packed, *, action_dim):
    B, S = state.shape
    hpad = w_packed.shape[1]
    s_pad = w_packed.shape[0] - 2 * hpad
    assert s_pad >= S and hpad >= action_dim + 2

    bt, b_pad = _choose_tiling(B, _num_tensorcores())

    x = state.astype(jnp.float32)
    if b_pad != B or s_pad != S:
        x = jnp.pad(x, ((0, b_pad - B), (0, s_pad - S)))

    kernel = functools.partial(_actor_critic_kernel,
                               s_pad=s_pad, hpad=hpad, n_act=action_dim)

    flops = 2 * b_pad * hpad * (s_pad + 2 * hpad)
    transcendentals = 3 * b_pad * hpad                      # 2x tanh + 1x exp per lane
    bytes_accessed = (x.size * 4 + w_packed.size * 2 + b_packed.size * 4
                      + b_pad * hpad * 4)

    out = pl.pallas_call(
        kernel,
        out_shape=jax.ShapeDtypeStruct((b_pad, hpad), jnp.float32),
        grid=(b_pad // bt,),
        in_specs=[
            pl.BlockSpec((bt, s_pad), lambda i: (i, 0)),     # state: streamed
            # Resident operands (constant index_map -> DMA'd once, stay in VMEM).
            # TODO(synk): pipeline_mode=pl.Buffered(1) would drop their second
            # pipeline buffer; skipped here since the bf16 slab is only ~70 KB.
            pl.BlockSpec(w_packed.shape, lambda i: (0, 0)),  # bf16 weight slab
            pl.BlockSpec(b_packed.shape, lambda i: (0, 0)),  # f32 bias slab
        ],
        out_specs=pl.BlockSpec((bt, hpad), lambda i: (i, 0)),  # lane-dense slab
        compiler_params=pltpu.CompilerParams(
            dimension_semantics=("parallel",)),              # shards tiles on 2-TC chips
        cost_estimate=pl.CostEstimate(flops=flops,
                                      transcendentals=transcendentals,
                                      bytes_accessed=bytes_accessed),
    )(x, w_packed, b_packed)
    return out[:B]


def actor_critic_forward(state, w_packed, b_packed, *, action_dim):
    """state: [B, S] -> (action_probs [B, A], state_values [B, 1])."""
    slab = _forward_slab(state, w_packed, b_packed, action_dim=action_dim)
    return slab[:, :action_dim], slab[:, action_dim:action_dim + 1]


def evaluate(state, action, w_packed, b_packed, *, action_dim):
    """PPO evaluate(): entropy comes fused from the kernel; only the per-action
    log-prob gather (B elements) happens outside."""
    slab = _forward_slab(state, w_packed, b_packed, action_dim=action_dim)
    probs = slab[:, :action_dim]
    values = slab[:, action_dim:action_dim + 1]
    entropy = slab[:, action_dim + 1]
    logp = jnp.log(jnp.take_along_axis(probs, action[:, None], axis=-1) + 1e-30)[:, 0]
    return logp, values, entropy


# TODO(synk): act()/act_max() Categorical sampling and action masking stay in
# plain JAX outside the kernel (no clean Pallas equivalent for RNG-based
# sampling of a single state here).


# ---------------------------------------------------------------------------
# Parameter construction & packing
# ---------------------------------------------------------------------------
def orthogonal(key, in_dim, out_dim, gain=1.0):
    a = jax.random.normal(key, (max(in_dim, out_dim), min(in_dim, out_dim)),
                          dtype=jnp.float32)
    q, r = jnp.linalg.qr(a)
    q = q * jnp.sign(jnp.diagonal(r))
    w = q[:in_dim, :out_dim] if in_dim >= out_dim else q[:out_dim, :in_dim].T
    return gain * w                                   # [in, out]


def make_params(key, state_dim, action_dim, hidden_dim):
    ks = jax.random.split(key, 6)
    z = lambda n: jnp.zeros((n,), jnp.float32)        # orthogonal init => zero bias
    return {
        "w1a": orthogonal(ks[0], state_dim, hidden_dim),  "b1a": z(hidden_dim),
        "w2a": orthogonal(ks[1], hidden_dim, hidden_dim), "b2a": z(hidden_dim),
        "w3a": orthogonal(ks[2], hidden_dim, action_dim), "b3a": z(action_dim),
        "w1c": orthogonal(ks[3], state_dim, hidden_dim),  "b1c": z(hidden_dim),
        "w2c": orthogonal(ks[4], hidden_dim, hidden_dim), "b2c": z(hidden_dim),
        "w3c": orthogonal(ks[5], hidden_dim, 1),          "b3c": z(1),
    }


def pack_params(p, state_dim, action_dim, hidden_dim):
    """Pack the 12 tensors into one bf16 weight slab [S_pad + 2*HPAD, HPAD] and
    one f32 bias slab [8, HPAD].  Actor occupies hidden lanes 0..H-1, critic
    lanes H..2H-1; layer-3 maps actor->cols 0..A-1 and critic->col A."""
    H, A, S = hidden_dim, action_dim, state_dim
    hpad = _round_up(max(2 * H, A + 2, 128), 128)     # A+2: value + entropy lanes
    s_pad = _round_up(S, 16)                          # bf16 sublane alignment

    w = jnp.zeros((s_pad + 2 * hpad, hpad), jnp.float32)
    # layer 1: [S, 2H] concat
    w = w.at[0:S, 0:H].set(p["w1a"])
    w = w.at[0:S, H:2 * H].set(p["w1c"])
    # layer 2: block-diagonal [2H, 2H]
    r2 = s_pad
    w = w.at[r2:r2 + H, 0:H].set(p["w2a"])
    w = w.at[r2 + H:r2 + 2 * H, H:2 * H].set(p["w2c"])
    # layer 3: block-diagonal [2H, A+1]
    r3 = s_pad + hpad
    w = w.at[r3:r3 + H, 0:A].set(p["w3a"])
    w = w.at[r3 + H:r3 + 2 * H, A:A + 1].set(p["w3c"])

    b = jnp.zeros((8, hpad), jnp.float32)
    b = b.at[0, 0:H].set(p["b1a"]).at[0, H:2 * H].set(p["b1c"])
    b = b.at[1, 0:H].set(p["b2a"]).at[1, H:2 * H].set(p["b2c"])
    b = b.at[2, 0:A].set(p["b3a"]).at[2, A:A + 1].set(p["b3c"])
    return w.astype(jnp.bfloat16), b


# ---------------------------------------------------------------------------
# Pure-JAX f32 reference (un-fused, un-packed) for correctness checking
# ---------------------------------------------------------------------------
def reference_forward(state, p):
    h = jnp.tanh(state @ p["w1a"] + p["b1a"])
    h = jnp.tanh(h @ p["w2a"] + p["b2a"])
    probs = jax.nn.softmax(h @ p["w3a"] + p["b3a"], axis=-1)
    c = jnp.tanh(state @ p["w1c"] + p["b1c"])
    c = jnp.tanh(c @ p["w2c"] + p["b2c"])
    value = c @ p["w3c"] + p["b3c"]
    return probs, value


if __name__ == "__main__":
    state_dim, action_dim, hidden_dim = 16, 8, 32
    batch = 64

    key = jax.random.PRNGKey(0)
    k_param, k_state, k_act = jax.random.split(key, 3)

    params = make_params(k_param, state_dim, action_dim, hidden_dim)
    w_packed, b_packed = pack_params(params, state_dim, action_dim, hidden_dim)

    state = jax.random.normal(k_state, (batch, state_dim), dtype=jnp.float32)
    action = jax.random.randint(k_act, (batch,), 0, action_dim)

    probs, values = actor_critic_forward(state, w_packed, b_packed,
                                         action_dim=action_dim)
    jax.block_until_ready((probs, values))

    # correctness vs pure-JAX f32 reference (tolerance accounts for bf16 matmul
    # operands with f32 accumulation)
    ref_probs, ref_values = reference_forward(state, params)
    assert probs.shape == (batch, action_dim) and values.shape == (batch, 1)
    assert jnp.allclose(values, ref_values, atol=3e-2, rtol=3e-2)
    assert jnp.allclose(probs, ref_probs, atol=3e-2, rtol=3e-2)
    # exact softmax normalization (approx reciprocal removed)
    assert jnp.all(jnp.abs(jnp.sum(probs, axis=-1) - 1.0) < 1e-3)

    logp, vals, ent = evaluate(state, action, w_packed, b_packed,
                               action_dim=action_dim)
    jax.block_until_ready((logp, vals, ent))
    assert logp.shape == (batch,) and vals.shape == (batch, 1)
    assert ent.shape == (batch,)
    # fused entropy must match entropy recomputed from the kernel's own probs
    ent_chk = -jnp.sum(probs * jnp.log(probs + 1e-30), axis=-1)
    assert jnp.allclose(ent, ent_chk, atol=1e-4)
    assert jnp.allclose(vals, values, atol=1e-5)
    assert bool(jnp.all(jnp.isfinite(logp)))

    print("KERNEL_OK")
</pallas_src>

<mosaic_0001>
module attributes {stable_mosaic.version = 11 : i64} {
  func.func @_actor_critic_kernel(%arg0: i32, %arg1: memref<64x16xf32, #tpu.memory_space<vmem>>, %arg2: memref<272x128xbf16, #tpu.memory_space<vmem>>, %arg3: memref<8x128xf32, #tpu.memory_space<vmem>>, %arg4: memref<64x128xf32, #tpu.memory_space<vmem>>) attributes {dimension_semantics = [#tpu.dimension_semantics<parallel>], iteration_bounds = array<i64: 1>, scalar_prefetch = 0 : i64, scratch_operands = 0 : i64, tpu.core_type = #tpu.core_type<tc>, window_params = [{transform_indices = @transform_0, window_bounds = array<i64: 64, 16>}, {pipeline_mode = #tpu.pipeline_mode<synchronous>, transform_indices = @transform_1, window_bounds = array<i64: 272, 128>}, {pipeline_mode = #tpu.pipeline_mode<synchronous>, transform_indices = @transform_2, window_bounds = array<i64: 8, 128>}, {transform_indices = @transform_3, window_bounds = array<i64: 64, 128>}]} {
    %c0 = arith.constant 0 : index
    %c0_0 = arith.constant 0 : index
    %0 = vector.load %arg1[%c0, %c0_0] : memref<64x16xf32, #tpu.memory_space<vmem>>, vector<64x16xf32>
    %1 = arith.truncf %0 : vector<64x16xf32> to vector<64x16xbf16>
    %c0_1 = arith.constant 0 : index
    %c0_2 = arith.constant 0 : index
    %2 = vector.load %arg2[%c0_1, %c0_2] : memref<272x128xbf16, #tpu.memory_space<vmem>>, vector<16x128xbf16>
    %c16 = arith.constant 16 : index
    %c0_3 = arith.constant 0 : index
    %3 = vector.load %arg2[%c16, %c0_3] : memref<272x128xbf16, #tpu.memory_space<vmem>>, vector<128x128xbf16>
    %c144 = arith.constant 144 : index
    %c0_4 = arith.constant 0 : index
    %4 = vector.load %arg2[%c144, %c0_4] : memref<272x128xbf16, #tpu.memory_space<vmem>>, vector<128x128xbf16>
    %c0_5 = arith.constant 0 : index
    %c0_6 = arith.constant 0 : index
    %5 = vector.load %arg3[%c0_5, %c0_6] : memref<8x128xf32, #tpu.memory_space<vmem>>, vector<1x128xf32>
    %c1 = arith.constant 1 : index
    %c0_7 = arith.constant 0 : index
    %6 = vector.load %arg3[%c1, %c0_7] : memref<8x128xf32, #tpu.memory_space<vmem>>, vector<1x128xf32>
    %c2 = arith.constant 2 : index
    %c0_8 = arith.constant 0 : index
    %7 = vector.load %arg3[%c2, %c0_8] : memref<8x128xf32, #tpu.memory_space<vmem>>, vector<1x128xf32>
    %cst = arith.constant dense<0.000000e+00> : vector<64x128xf32>
    %8 = tpu.matmul %1, %2, %cst {dimension_numbers = #tpu.dot_dimension_numbers<[1], [0], [0], [1], [0, 0, 1, 1], [], []>} : vector<64x16xbf16>, vector<16x128xbf16>, vector<64x128xf32> -> vector<64x128xf32>
    %9 = vector.broadcast %5 : vector<1x128xf32> to vector<64x128xf32>
    %10 = arith.addf %8, %9 : vector<64x128xf32>
    %11 = math.tanh %10 : vector<64x128xf32>
    %12 = arith.truncf %11 : vector<64x128xf32> to vector<64x128xbf16>
    %cst_9 = arith.constant dense<0.000000e+00> : vector<64x128xf32>
    %13 = tpu.matmul %12, %3, %cst_9 {dimension_numbers = #tpu.dot_dimension_numbers<[1], [0], [0], [1], [0, 0, 1, 1], [], []>} : vector<64x128xbf16>, vector<128x128xbf16>, vector<64x128xf32> -> vector<64x128xf32>
    %14 = vector.broadcast %6 : vector<1x128xf32> to vector<64x128xf32>
    %15 = arith.addf %13, %14 : vector<64x128xf32>
    %16 = math.tanh %15 : vector<64x128xf32>
    %17 = arith.truncf %16 : vector<64x128xf32> to vector<64x128xbf16>
    %cst_10 = arith.constant dense<0.000000e+00> : vector<64x128xf32>
    %18 = tpu.matmul %17, %4, %cst_10 {dimension_numbers = #tpu.dot_dimension_numbers<[1], [0], [0], [1], [0, 0, 1, 1], [], []>} : vector<64x128xbf16>, vector<128x128xbf16>, vector<64x128xf32> -> vector<64x128xf32>
    %19 = vector.broadcast %7 : vector<1x128xf32> to vector<64x128xf32>
    %20 = arith.addf %18, %19 : vector<64x128xf32>
    %21 = tpu.iota {dimensions = array<i32: 1>} : vector<64x128xi32>
    %c8_i32 = arith.constant 8 : i32
    %22 = vector.broadcast %c8_i32 : i32 to vector<64x128xi32>
    %23 = arith.cmpi slt, %21, %22 : vector<64x128xi32>
    %cst_11 = arith.constant -1.000000e+30 : f32
    %24 = vector.broadcast %cst_11 : f32 to vector<64x128xf32>
    %25 = arith.select %23, %20, %24 : vector<64x128xi1>, vector<64x128xf32>
    %cst_12 = arith.constant dense<0xFF800000> : vector<64xf32>
    %26 = vector.multi_reduction <maximumf>, %25, %cst_12 [1] : vector<64x128xf32> to vector<64xf32>
    %27 = vector.shape_cast %26 : vector<64xf32> to vector<64x1xf32>
    %28 = vector.broadcast %27 : vector<64x1xf32> to vector<64x128xf32>
    %29 = arith.subf %25, %28 : vector<64x128xf32>
    %30 = math.exp %29 : vector<64x128xf32>
    %cst_13 = arith.constant dense<0.000000e+00> : vector<64xf32>
    %31 = vector.multi_reduction <add>, %30, %cst_13 [1] : vector<64x128xf32> to vector<64xf32>
    %32 = vector.shape_cast %31 : vector<64xf32> to vector<64x1xf32>
    %33 = vector.broadcast %32 : vector<64x1xf32> to vector<64x128xf32>
    %34 = arith.divf %30, %33 : vector<64x128xf32>
    %35 = math.log %32 : vector<64x1xf32>
    %36 = vector.broadcast %35 : vector<64x1xf32> to vector<64x128xf32>
    %37 = arith.subf %29, %36 : vector<64x128xf32>
    %38 = arith.mulf %34, %37 : vector<64x128xf32>
    %cst_14 = arith.constant 0.000000e+00 : f32
    %39 = vector.broadcast %cst_14 : f32 to vector<64x128xf32>
    %40 = arith.select %23, %38, %39 : vector<64x128xi1>, vector<64x128xf32>
    %cst_15 = arith.constant dense<0.000000e+00> : vector<64xf32>
    %41 = vector.multi_reduction <add>, %40, %cst_15 [1] : vector<64x128xf32> to vector<64xf32>
    %42 = vector.shape_cast %41 : vector<64xf32> to vector<64x1xf32>
    %cst_16 = arith.constant 0.000000e+00 : f32
    %43 = vector.broadcast %cst_16 : f32 to vector<64x1xf32>
    %44 = arith.subf %43, %42 : vector<64x1xf32>
    %cst_17 = arith.constant 0.000000e+00 : f32
    %45 = vector.broadcast %cst_17 : f32 to vector<64x128xf32>
    %46 = arith.select %23, %34, %45 : vector<64x128xi1>, vector<64x128xf32>
    %c8_i32_18 = arith.constant 8 : i32
    %47 = vector.broadcast %c8_i32_18 : i32 to vector<64x128xi32>
    %48 = arith.cmpi eq, %21, %47 : vector<64x128xi32>
    %49 = arith.select %48, %20, %46 : vector<64x128xi1>, vector<64x128xf32>
    %c9_i32 = arith.constant 9 : i32
    %50 = vector.broadcast %c9_i32 : i32 to vector<64x128xi32>
    %51 = arith.cmpi eq, %21, %50 : vector<64x128xi32>
    %52 = vector.shape_cast %44 : vector<64x1xf32> to vector<64x1xf32>
    %53 = vector.broadcast %52 : vector<64x1xf32> to vector<64x128xf32>
    %54 = arith.select %51, %53, %49 : vector<64x128xi1>, vector<64x128xf32>
    %c0_19 = arith.constant 0 : index
    %c0_20 = arith.constant 0 : index
    %55 = vector.load %arg4[%c0_19, %c0_20] : memref<64x128xf32, #tpu.memory_space<vmem>>, vector<64x128xf32>
    tpu.vector_store %arg4[%c0_19, %c0_20], %54 {strides = array<i32>} : memref<64x128xf32, #tpu.memory_space<vmem>>, vector<64x128xf32>,
    return
  }
  func.func @transform_0(%arg0: i32) -> (i32, i32) {
    %c0_i32 = arith.constant 0 : i32
    %c0_i32_0 = arith.constant 0 : i32
    return %arg0, %c0_i32 : i32, i32
  }
  func.func @transform_1(%arg0: i32) -> (i32, i32) {
    %c0_i32 = arith.constant 0 : i32
    %c0_i32_0 = arith.constant 0 : i32
    %c0_i32_1 = arith.constant 0 : i32
    return %c0_i32, %c0_i32_0 : i32, i32
  }
  func.func @transform_2(%arg0: i32) -> (i32, i32) {
    %c0_i32 = arith.constant 0 : i32
    %c0_i32_0 = arith.constant 0 : i32
    %c0_i32_1 = arith.constant 0 : i32
    return %c0_i32, %c0_i32_0 : i32, i32
  }
  func.func @transform_3(%arg0: i32) -> (i32, i32) {
    %c0_i32 = arith.constant 0 : i32
    %c0_i32_0 = arith.constant 0 : i32
    return %arg0, %c0_i32 : i32, i32
  }
}

</mosaic_0001>

<bundles_post_ra>
// kernel: _forward_slab.1
= control target key start
LH: loop header
LB: loop body
LE: loop exit
PB: predicated region body
PF: predicated region fallthrough
CT: control target
= control target key end

     0   :  { %8 = vsyncpa [#allocation3], 0  ;;  %s1134_s0 = inlined_call_operand.vmem [shape: f32[64,16], index: 0, kind: input, shape index: {}]   ;;  %s1135_s1 = inlined_call_operand.hbm [shape: bf16[272,128], index: 1, kind: input, shape index: {}]   ;;  %s1136_s2 = inlined_call_operand.vmem [shape: f32[8,128], index: 2, kind: input, shape index: {}]   ;;  %s1137_s3 = inlined_call_operand.hbm [shape: f32[64,128], index: 3, kind: output, shape index: {}]  }
   0x1   :  { %9 = vsyncpa [#allocation4], 0  ;;  %s16_s14 = sshll.u32 %s1135_s1, 4  ;;  %s860_s15 = smov [#allocation2]   ;;  %s17_s14 = int_to_ptr.hbm [resolvable:$true] %s16_s14 }
   0x2   :  { %s18_s16 = sshll.u32 %s860_s15, 4  ;;  %s861_s17 = smov 64   ;;  %s19_s16 = int_to_ptr.vmem [resolvable:$true] %s18_s16 }
   0x3   :  { %s862_s18 = smov 4  }
   0x4   :  { %24 = dma.hbm_to_vmem [thread:$0]  %s17_s14, 2176, %s19_s16, [#allocation3], %s861_s17, %s861_s17, %s862_s18  }
   0x5   :  { %856 = dma.done.wait [#allocation3], 2176  }
   0x6   :  { %857 = vsyncadd [#allocation3], 4294965120  ;;  %v686_v0 = vld [vmem:[#allocation2] sm:$0xff]  ;;  %v33_v2 = vld [vmem:[%s1134_s0 + $0x8] sm:$0xff]  ;;  %vm88_vm0 = vcmask 130048   ;;  %s601_s15 = sshll.u32 %s1137_s3, 4  ;;  %s602_s15 = int_to_ptr.hbm [resolvable:$true] %s601_s15 }
   0x7   :  { %v32_v1 = vld [vmem:[%s1134_s0] sm:$0xff]  ;;  %108 = vmatpush.bf16.msra.mxu0 %v686_v0  ;;  %v34_v4 = vld [vmem:[%s1134_s0 + $0x10] sm:$0xff]  ;;  %v35_v5 = vld [vmem:[%s1134_s0 + $0x18] sm:$0xff]  ;;  %s864_s16 = smov 128   ;;  %s865_s17 = smov 8  }
   0x8   :  { %v40_v3 = vpack.c.bf16 %v33_v2, %v32_v1  ;;  %v41_v6 = vpack.c.bf16 %v35_v5, %v34_v4  ;;  %v694_v7 = vld [vmem:[#allocation2 + $0x40] sm:$0xff]  ;;  %v693_v8 = vld [vmem:[#allocation2 + $0x38] sm:$0xff]  ;;  %v692_v9 = vld [vmem:[#allocation2 + $0x30] sm:$0xff] }
   0x9   :  { %191 = vmatpush.bf16.msra.mxu1 %v694_v7  ;;  %703 = vmatpush.bf16.msra.mxu3 %v694_v7  ;;  %v36_v10 = vld [vmem:[%s1134_s0 + $0x20] sm:$0xff]  ;;  %v37_v11 = vld [vmem:[%s1134_s0 + $0x28] sm:$0xff]  ;;  %v38_v13 = vld [vmem:[%s1134_s0 + $0x30] sm:$0xff] }
   0xa   :  { %618 = vmatmul.msk.bf16.vlgmr.msra.gmra.mxu0 %vm88_vm0, %v40_v3  ;;  %v42_v12 = vpack.c.bf16 %v37_v11, %v36_v10  ;;  %v39_v14 = vld [vmem:[%s1134_s0 + $0x38] sm:$0xff]  ;;  %v691_v16 = vld [vmem:[#allocation2 + $0x28] sm:$0xff]  ;;  %v690_v17 = vld [vmem:[#allocation2 + $0x20] sm:$0xff] }
   0xb   :  { %v43_v15 = vpack.c.bf16 %v39_v14, %v38_v13  ;;  %v689_v18 = vld [vmem:[#allocation2 + $0x18] sm:$0xff]  ;;  %v688_v19 = vld [vmem:[#allocation2 + $0x10] sm:$0xff]  ;;  %v687_v20 = vld [vmem:[#allocation2 + $0x8] sm:$0xff] }
   0xc   :  { %v725_v22 = vld [vmem:[%s1136_s2] ss:$0 sm:$0xff]  ;;  %v701_v39 = vld [vmem:[#allocation2 + $0x78] sm:$0xff]  ;;  %v700_v42 = vld [vmem:[#allocation2 + $0x70] sm:$0xff] }
   0xd   :  { %192 = vmatpush.bf16.msra.mxu1 %v693_v8  ;;  %704 = vmatpush.bf16.msra.mxu3 %v693_v8  ;;  %v702_v37 = vld [vmem:[#allocation2 + $0x80] sm:$0xff]  ;;  %v699_v53 = vld [vmem:[#allocation2 + $0x68] sm:$0xff]  ;;  %v697_v55 = vld [vmem:[#allocation2 + $0x58] sm:$0xff] }
   0xe   :  { %711 = vmatpush.bf16.msra.mxu2 %v702_v37  ;;  %v698_v54 = vld [vmem:[#allocation2 + $0x60] sm:$0xff]  ;;  %v696_v56 = vld [vmem:[#allocation2 + $0x50] sm:$0xff]  ;;  %v695_v57 = vld [vmem:[#allocation2 + $0x48] sm:$0xff] }
   0xf   :  { %v726_v59 = vld [vmem:[%s1136_s2 + $0x1] ss:$0 sm:$0xff] }
  0x11   :  { %193 = vmatpush.bf16.msra.mxu1 %v692_v9  ;;  %705 = vmatpush.bf16.msra.mxu3 %v692_v9 }
  0x12   :  { %712 = vmatpush.bf16.msra.mxu2 %v701_v39 }
  0x15   :  { %194 = vmatpush.bf16.msra.mxu1 %v691_v16  ;;  %706 = vmatpush.bf16.msra.mxu3 %v691_v16 }
  0x16   :  { %713 = vmatpush.bf16.msra.mxu2 %v700_v42 }
  0x19   :  { %195 = vmatpush.bf16.msra.mxu1 %v690_v17  ;;  %707 = vmatpush.bf16.msra.mxu3 %v690_v17 }
  0x1a   :  { %619 = vmatmul.msk.bf16.gmra.mxu0 %vm88_vm0, %v41_v6  ;;  %714 = vmatpush.bf16.msra.mxu2 %v699_v53 }
  0x1d   :  { %196 = vmatpush.bf16.msra.mxu1 %v689_v18  ;;  %708 = vmatpush.bf16.msra.mxu3 %v689_v18 }
  0x1e   :  { %715 = vmatpush.bf16.msra.mxu2 %v698_v54 }
  0x21   :  { %197 = vmatpush.bf16.msra.mxu1 %v688_v19  ;;  %709 = vmatpush.bf16.msra.mxu3 %v688_v19 }
  0x22   :  { %716 = vmatpush.bf16.msra.mxu2 %v697_v55 }
  0x25   :  { %198 = vmatpush.bf16.msra.mxu1 %v687_v20  ;;  %710 = vmatpush.bf16.msra.mxu3 %v687_v20 }
  0x26   :  { %717 = vmatpush.bf16.msra.mxu2 %v696_v56 }
  0x29   :  { %281 = vmatpush.bf16.msrb.mxu1 %v702_v37 }
  0x2a   :  { %620 = vmatmul.msk.bf16.gmra.mxu0 %vm88_vm0, %v42_v12  ;;  %718 = vmatpush.bf16.msra.mxu2 %v695_v57 }
  0x2d   :  { %282 = vmatpush.bf16.msrb.mxu1 %v701_v39 }
  0x31   :  { %283 = vmatpush.bf16.msrb.mxu1 %v700_v42 }
  0x35   :  { %284 = vmatpush.bf16.msrb.mxu1 %v699_v53 }
  0x39   :  { %285 = vmatpush.bf16.msrb.mxu1 %v698_v54 }
  0x3a   :  { %621 = vmatmul.msk.bf16.gmra.mxu0 %vm88_vm0, %v43_v15 }
  0x3d   :  { %286 = vmatpush.bf16.msrb.mxu1 %v697_v55 }
  0x41   :  { %287 = vmatpush.bf16.msrb.mxu1 %v696_v56 }
  0x45   :  { %288 = vmatpush.bf16.msrb.mxu1 %v695_v57 }
  0x87   :  { %v110_v21 = vpop.f32.mrf.mxu0 }
  0x88   :  { %v111_v23 = vadd.f32 %v725_v22, %v110_v21 }
  0x8a   :  { %728 = vtanh.f32 %v111_v23  ;;  %v310_v23 = vlaneseq }
  0x8f   :  { %v112_v24 = vpop.f32.mrf.mxu0 }
  0x90   :  { %v113_v25 = vadd.f32 %v725_v22, %v112_v24  ;;  %v729_v26 = vpop.eup %728  ;;  %v923_v24 = vand.u32 127, %v310_v23 }
  0x92   :  { %730 = vtanh.f32 %v113_v25  ;;  %v727_v25 = vld [vmem:[%s1136_s2 + $0x2] ss:$0 sm:$0xff]  ;;  %vm312_vm1 = vcmp.lt.s32.totalorder %v923_v24, 8  ;;  %s863_s2 = smov [#allocation5]  }
  0x93   :  { %s599_s12 = sshll.u32 %s863_s2, 4  ;;  %s600_s12 = int_to_ptr.vmem [resolvable:$true] %s599_s12 }
  0x97   :  { %v115_v27 = vpop.f32.mrf.mxu0 }
  0x98   :  { %v731_v28 = vpop.eup %730  ;;  %v116_v30 = vadd.f32 %v725_v22, %v115_v27 }
  0x99   :  { %v138_v29 = vpack.c.bf16 %v731_v28, %v729_v26 }
  0x9a   :  { %732 = vtanh.f32 %v116_v30 }
  0x9b   :  { %199 = vmatmul.bf16.vlgmr.msra.gmra.mxu1 %v138_v29 }
  0x9f   :  { %v117_v31 = vpop.f32.mrf.mxu0 }
  0xa0   :  { %v118_v32 = vadd.f32 %v725_v22, %v117_v31  ;;  %v733_v33 = vpop.eup %732 }
  0xa2   :  { %734 = vtanh.f32 %v118_v32 }
  0xa7   :  { %v120_v34 = vpop.f32.mrf.mxu0 }
  0xa8   :  { %v735_v35 = vpop.eup %734  ;;  %v121_v38 = vadd.f32 %v725_v22, %v120_v34 }
  0xa9   :  { %v139_v36 = vpack.c.bf16 %v735_v35, %v733_v33 }
  0xaa   :  { %736 = vtanh.f32 %v121_v38 }
  0xab   :  { %204 = vmatmul.bf16.vlgmr.msra.gmra.mxu3 %v139_v36 }
  0xaf   :  { %v122_v40 = vpop.f32.mrf.mxu0 }
  0xb0   :  { %v123_v41 = vadd.f32 %v725_v22, %v122_v40  ;;  %v737_v43 = vpop.eup %736 }
  0xb2   :  { %738 = vtanh.f32 %v123_v41 }
  0xb7   :  { %v125_v44 = vpop.f32.mrf.mxu0 }
  0xb8   :  { %v739_v45 = vpop.eup %738  ;;  %v126_v47 = vadd.f32 %v725_v22, %v125_v44 }
  0xb9   :  { %v140_v46 = vpack.c.bf16 %v739_v45, %v737_v43 }
  0xba   :  { %740 = vtanh.f32 %v126_v47 }
  0xbb   :  { %209 = vmatmul.bf16.gmra.mxu3 %v140_v46 }
  0xbf   :  { %v127_v48 = vpop.f32.mrf.mxu0 }
  0xc0   :  { %v128_v49 = vadd.f32 %v725_v22, %v127_v48  ;;  %v741_v50 = vpop.eup %740 }
  0xc2   :  { %742 = vtanh.f32 %v128_v49 }
  0xc8   :  { %v743_v51 = vpop.eup %742 }
  0xc9   :  { %v141_v52 = vpack.c.bf16 %v743_v51, %v741_v50 }
  0xcb   :  { %214 = vmatmul.bf16.gmra.mxu3 %v141_v52 }
 0x118   :  { %v200_v58 = vpop.f32.mrf.mxu1 }
 0x119   :  { %v201_v60 = vadd.f32 %v726_v59, %v200_v58 }
 0x11b   :  { %744 = vtanh.f32 %v201_v60 }
 0x120   :  { %v202_v61 = vpop.f32.mrf.mxu1 }
 0x121   :  { %v203_v62 = vadd.f32 %v726_v59, %v202_v61  ;;  %v745_v63 = vpop.eup %744 }
 0x123   :  { %746 = vtanh.f32 %v203_v62 }
 0x129   :  { %v747_v0 = vpop.eup %746 }
 0x12a   :  { %v228_v1 = vpack.c.bf16 %v747_v0, %v745_v63 }
 0x12c   :  { %289 = vmatmul.bf16.vlgmr.msrb.gmra.mxu1 %v228_v1 }
 0x12e   :  { %v205_v2 = vpop.f32.mrf.mxu3 }
 0x12f   :  { %v206_v3 = vadd.f32 %v726_v59, %v205_v2 }
 0x131   :  { %748 = vtanh.f32 %v206_v3 }
 0x136   :  { %v207_v4 = vpop.f32.mrf.mxu3 }
 0x137   :  { %v208_v5 = vadd.f32 %v726_v59, %v207_v4  ;;  %v749_v6 = vpop.eup %748 }
 0x139   :  { %750 = vtanh.f32 %v208_v5 }
 0x13e   :  { %v210_v7 = vpop.f32.mrf.mxu3 }
 0x13f   :  { %v751_v8 = vpop.eup %750  ;;  %v211_v10 = vadd.f32 %v726_v59, %v210_v7 }
 0x140   :  { %v229_v9 = vpack.c.bf16 %v751_v8, %v749_v6 }
 0x141   :  { %752 = vtanh.f32 %v211_v10 }
 0x142   :  { %294 = vmatmul.bf16.vlgmr.msra.gmra.mxu2 %v229_v9 }
 0x146   :  { %v212_v11 = vpop.f32.mrf.mxu3 }
 0x147   :  { %v213_v12 = vadd.f32 %v726_v59, %v212_v11  ;;  %v753_v13 = vpop.eup %752 }
 0x149   :  { %754 = vtanh.f32 %v213_v12 }
 0x14e   :  { %v215_v14 = vpop.f32.mrf.mxu3 }
 0x14f   :  { %v755_v15 = vpop.eup %754  ;;  %v216_v17 = vadd.f32 %v726_v59, %v215_v14 }
 0x150   :  { %v230_v16 = vpack.c.bf16 %v755_v15, %v753_v13 }
 0x151   :  { %756 = vtanh.f32 %v216_v17 }
 0x152   :  { %299 = vmatmul.bf16.gmra.mxu2 %v230_v16 }
 0x156   :  { %v217_v18 = vpop.f32.mrf.mxu3 }
 0x157   :  { %v218_v19 = vadd.f32 %v726_v59, %v217_v18  ;;  %v757_v20 = vpop.eup %756 }
 0x159   :  { %758 = vtanh.f32 %v218_v19 }
 0x15f   :  { %v759_v21 = vpop.eup %758 }
 0x160   :  { %v231_v22 = vpack.c.bf16 %v759_v21, %v757_v20 }
 0x162   :  { %304 = vmatmul.bf16.gmra.mxu2 %v231_v22 }
 0x1a9   :  { %v290_v26 = vpop.f32.mrf.mxu1 }
 0x1aa   :  { %v929_v27 = vadd.f32 %v727_v25, %v290_v26 }
 0x1ac   :  { %v313_v28 = vsel %vm312_vm1, %v929_v27, -1e+30 }
 0x1ad   :  { %321 = vmax.xlane.f32.xlu0 %v313_v28 }
 0x1b1   :  { %v292_v29 = vpop.f32.mrf.mxu1 }
 0x1b2   :  { %v934_v30 = vadd.f32 %v727_v25, %v292_v29 }
 0x1b4   :  { %v314_v31 = vsel %vm312_vm1, %v934_v30, -1e+30 }
 0x1b5   :  { %323 = vmax.xlane.f32.xlu0 %v314_v31 }
 0x1c5   :  { %v295_v32 = vpop.f32.mrf.mxu2 }
 0x1c6   :  { %v939_v33 = vadd.f32 %v727_v25, %v295_v32 }
 0x1c8   :  { %v315_v34 = vsel %vm312_vm1, %v939_v33, -1e+30 }
 0x1c9   :  { %325 = vmax.xlane.f32.xlu1 %v315_v34 }
 0x1cd   :  { %v297_v35 = vpop.f32.mrf.mxu2 }
 0x1ce   :  { %v944_v36 = vadd.f32 %v727_v25, %v297_v35 }
 0x1d0   :  { %v316_v37 = vsel %vm312_vm1, %v944_v36, -1e+30 }
 0x1d1   :  { %327 = vmax.xlane.f32.xlu1 %v316_v37 }
 0x1d5   :  { %v300_v38 = vpop.f32.mrf.mxu2 }
 0x1d6   :  { %v949_v39 = vadd.f32 %v727_v25, %v300_v38 }
 0x1d8   :  { %v317_v40 = vsel %vm312_vm1, %v949_v39, -1e+30 }
 0x1d9   :  { %329 = vmax.xlane.f32.xlu2 %v317_v40 }
 0x1dd   :  { %v302_v41 = vpop.f32.mrf.mxu2 }
 0x1de   :  { %v954_v42 = vadd.f32 %v727_v25, %v302_v41 }
 0x1e0   :  { %v318_v43 = vsel %vm312_vm1, %v954_v42, -1e+30 }
 0x1e1   :  { %331 = vmax.xlane.f32.xlu2 %v318_v43 }
 0x1e5   :  { %v305_v44 = vpop.f32.mrf.mxu2 }
 0x1e6   :  { %v959_v45 = vadd.f32 %v727_v25, %v305_v44 }
 0x1e8   :  { %v319_v46 = vsel %vm312_vm1, %v959_v45, -1e+30 }
 0x1e9   :  { %333 = vmax.xlane.f32.xlu0 %v319_v46 }
 0x1ed   :  { %v307_v47 = vpop.f32.mrf.mxu2 }
 0x1ee   :  { %v964_v48 = vadd.f32 %v727_v25, %v307_v47 }
 0x1f0   :  { %v320_v49 = vsel %vm312_vm1, %v964_v48, -1e+30 }
 0x1f1   :  { %335 = vmax.xlane.f32.xlu1 %v320_v49 }
 0x220   :  { %v322_v50 = vpop.xlane.xlu0 %321 }
 0x221   :  { %v969_v51 = vsub.f32 %v313_v28, %v322_v50 }
 0x223   :  { %v345_v52 = vmul.f32 1.442695, %v969_v51 }
 0x225   :  { %760 = vpow2.f32 %v345_v52 }
 0x228   :  { %v324_v53 = vpop.xlane.xlu0 %323 }
 0x229   :  { %v972_v54 = vsub.f32 %v314_v31, %v324_v53 }
 0x22b   :  { %v974_v55 = vpop.eup %760  ;;  %v347_v56 = vmul.f32 1.442695, %v972_v54 }
 0x22c   :  { %361 = vadd.xlane.f32.xlu2 %v974_v55 }
 0x22d   :  { %762 = vpow2.f32 %v347_v56 }
 0x233   :  { %v978_v57 = vpop.eup %762 }
 0x234   :  { %363 = vadd.xlane.f32.xlu0 %v978_v57 }
 0x23c   :  { %v326_v58 = vpop.xlane.xlu1 %325 }
 0x23d   :  { %v981_v59 = vsub.f32 %v315_v34, %v326_v58 }
 0x23f   :  { %v349_v60 = vmul.f32 1.442695, %v981_v59 }
 0x241   :  { %764 = vpow2.f32 %v349_v60 }
 0x244   :  { %v328_v61 = vpop.xlane.xlu1 %327 }
 0x245   :  { %v984_v62 = vsub.f32 %v316_v37, %v328_v61 }
 0x247   :  { %v986_v63 = vpop.eup %764  ;;  %v351_v0 = vmul.f32 1.442695, %v984_v62 }
 0x248   :  { %365 = vadd.xlane.f32.xlu1 %v986_v63 }
 0x249   :  { %766 = vpow2.f32 %v351_v0 }
 0x24c   :  { %v330_v1 = vpop.xlane.xlu2 %329 }
 0x24d   :  { %v990_v2 = vsub.f32 %v317_v40, %v330_v1 }
 0x24f   :  { %v992_v3 = vpop.eup %766  ;;  %v353_v4 = vmul.f32 1.442695, %v990_v2 }
 0x250   :  { %367 = vadd.xlane.f32.xlu2 %v992_v3 }
 0x251   :  { %768 = vpow2.f32 %v353_v4 }
 0x254   :  { %v332_v5 = vpop.xlane.xlu2 %331 }
 0x255   :  { %v996_v6 = vsub.f32 %v318_v43, %v332_v5 }
 0x257   :  { %v998_v7 = vpop.eup %768  ;;  %v355_v8 = vmul.f32 1.442695, %v996_v6 }
 0x258   :  { %369 = vadd.xlane.f32.xlu0 %v998_v7 }
 0x259   :  { %770 = vpow2.f32 %v355_v8 }
 0x25c   :  { %v334_v9 = vpop.xlane.xlu0 %333 }
 0x25d   :  { %v1002_v10 = vsub.f32 %v319_v46, %v334_v9 }
 0x25f   :  { %v1004_v11 = vpop.eup %770  ;;  %v357_v12 = vmul.f32 1.442695, %v1002_v10 }
 0x260   :  { %371 = vadd.xlane.f32.xlu1 %v1004_v11 }
 0x261   :  { %772 = vpow2.f32 %v357_v12 }
 0x264   :  { %v336_v13 = vpop.xlane.xlu1 %335 }
 0x265   :  { %v1008_v14 = vsub.f32 %v320_v49, %v336_v13 }
 0x267   :  { %v1010_v15 = vpop.eup %772  ;;  %v359_v16 = vmul.f32 1.442695, %v1008_v14 }
 0x268   :  { %373 = vadd.xlane.f32.xlu2 %v1010_v15 }
 0x269   :  { %774 = vpow2.f32 %v359_v16 }
 0x26f   :  { %v1014_v17 = vpop.eup %774 }
 0x270   :  { %375 = vadd.xlane.f32.xlu0 %v1014_v17 }
 0x29f   :  { %v362_v18 = vpop.xlane.xlu2 %361 }
 0x2a0   :  { %776 = vrcp.f32 %v362_v18  ;;  %v388_v25 = vand.u32 2147483648, %v362_v18  ;;  %v386_v28 = vand.u32 2147483647, %v362_v18  ;;  %vm382_vm3 = vweird.f32 %v362_v18 }
 0x2a1   :  { %778 = vlog2.f32 %v362_v18 }
 0x2a2   :  { %v389_v34 = vor.u32 1.1754944e-38, %v388_v25  ;;  %vm387_vm5 = vcmp.eq.f32.partialorder %v386_v28, 8.507059e+37 }
 0x2a6   :  { %v777_v19 = vpop.eup %776 }
 0x2a7   :  { %v378_v20 = vmul.f32 %v777_v19, %v362_v18  ;;  %v364_v21 = vpop.xlane.xlu0 %363  ;;  %v779_v23 = vpop.eup %778  ;;  %vm383_vm2 = vweird.f32 %v777_v19 }
 0x2a8   :  { %780 = vrcp.f32 %v364_v21  ;;  %v498_v31 = vmul.f32 0.6931472, %v779_v23  ;;  %vm384_vm4 = vmor %vm382_vm3, %vm383_vm2  ;;  %v403_v46 = vand.u32 2147483648, %v364_v21  ;;  %v401_v50 = vand.u32 2147483647, %v364_v21 }
 0x2a9   :  { %v379_v22 = vsub.f32 1.0, %v378_v20  ;;  %782 = vlog2.f32 %v364_v21  ;;  %vm397_vm7 = vweird.f32 %v364_v21 }
 0x2aa   :  { %v513_v43 = vsub.f32 %v969_v51, %v498_v31  ;;  %v404_v58 = vor.u32 1.1754944e-38, %v403_v46  ;;  %vm402_vm9 = vcmp.eq.f32.partialorder %v401_v50, 8.507059e+37 }
 0x2ab   :  { %v380_v26 = vmul.f32 %v777_v19, %v379_v22 }
 0x2ad   :  { %v381_v29 = vadd.f32 %v777_v19, %v380_v26 }
 0x2ae   :  { %v781_v32 = vpop.eup %780 }
 0x2af   :  { %v393_v35 = vmul.f32 %v781_v32, %v364_v21  ;;  %v385_v37 = vsel %vm384_vm4, %v777_v19, %v381_v29  ;;  %v783_v44 = vpop.eup %782  ;;  %vm398_vm6 = vweird.f32 %v781_v32 }
 0x2b0   :  { %v390_v38 = vsel %vm387_vm5, %v389_v34, %v385_v37  ;;  %v500_v56 = vmul.f32 0.6931472, %v783_v44  ;;  %vm399_vm8 = vmor %vm397_vm7, %vm398_vm6 }
 0x2b1   :  { %v394_v40 = vsub.f32 1.0, %v393_v35  ;;  %v1018_v41 = vmul.f32 %v974_v55, %v390_v38 }
 0x2b2   :  { %v514_v61 = vsub.f32 %v972_v54, %v500_v56 }
 0x2b3   :  { %v521_v47 = vmul.f32 %v513_v43, %v1018_v41  ;;  %v395_v49 = vmul.f32 %v781_v32, %v394_v40 }
 0x2b5   :  { %v529_v52 = vsel %vm312_vm1, %v521_v47, 0.0  ;;  %v396_v53 = vadd.f32 %v781_v32, %v395_v49 }
 0x2b6   :  { %537 = vadd.xlane.f32.xlu1 %v529_v52 }
 0x2b7   :  { %v400_v55 = vsel %vm399_vm8, %v781_v32, %v396_v53 }
 0x2b8   :  { %v405_v60 = vsel %vm402_vm9, %v404_v58, %v400_v55 }
 0x2b9   :  { %v1025_v51 = vmul.f32 %v978_v57, %v405_v60 }
 0x2bb   :  { %v366_v0 = vpop.xlane.xlu1 %365  ;;  %v522_v1 = vmul.f32 %v514_v61, %v1025_v51 }
 0x2bc   :  { %784 = vrcp.f32 %v366_v0  ;;  %v418_v16 = vand.u32 2147483648, %v366_v0  ;;  %v416_v18 = vand.u32 2147483647, %v366_v0  ;;  %vm412_vm11 = vweird.f32 %v366_v0 }
 0x2bd   :  { %v530_v4 = vsel %vm312_vm1, %v522_v1, 0.0  ;;  %786 = vlog2.f32 %v366_v0 }
 0x2be   :  { %539 = vadd.xlane.f32.xlu2 %v530_v4  ;;  %v419_v21 = vor.u32 1.1754944e-38, %v418_v16  ;;  %vm417_vm13 = vcmp.eq.f32.partialorder %v416_v18, 8.507059e+37 }
 0x2c2   :  { %v785_v5 = vpop.eup %784 }
 0x2c3   :  { %v408_v8 = vmul.f32 %v785_v5, %v366_v0  ;;  %v368_v9 = vpop.xlane.xlu2 %367  ;;  %v787_v13 = vpop.eup %786  ;;  %vm413_vm10 = vweird.f32 %v785_v5 }
 0x2c4   :  { %788 = vrcp.f32 %v368_v9  ;;  %v502_v19 = vmul.f32 0.6931472, %v787_v13  ;;  %vm414_vm12 = vmor %vm412_vm11, %vm413_vm10  ;;  %v433_v34 = vand.u32 2147483648, %v368_v9  ;;  %v431_v38 = vand.u32 2147483647, %v368_v9 }
 0x2c5   :  { %v409_v12 = vsub.f32 1.0, %v408_v8  ;;  %790 = vlog2.f32 %v368_v9  ;;  %vm427_vm15 = vweird.f32 %v368_v9 }
 0x2c6   :  { %v515_v31 = vsub.f32 %v981_v59, %v502_v19  ;;  %vm432_vm2 = vcmp.eq.f32.partialorder %v431_v38, 8.507059e+37 }
 0x2c7   :  { %v410_v57 = vmul.f32 %v785_v5, %v409_v12 }
 0x2c9   :  { %v411_v54 = vadd.f32 %v785_v5, %v410_v57 }
 0x2ca   :  { %v789_v20 = vpop.eup %788 }
 0x2cb   :  { %v423_v22 = vmul.f32 %v789_v20, %v368_v9  ;;  %v370_v23 = vpop.xlane.xlu0 %369  ;;  %v415_v25 = vsel %vm414_vm12, %v785_v5, %v411_v54  ;;  %v791_v32 = vpop.eup %790  ;;  %vm428_vm14 = vweird.f32 %v789_v20 }
 0x2cc   :  { %792 = vrcp.f32 %v370_v23  ;;  %v420_v26 = vsel %vm417_vm13, %v419_v21, %v415_v25  ;;  %v504_v44 = vmul.f32 0.6931472, %v791_v32  ;;  %vm429_vm0 = vmor %vm427_vm15, %vm428_vm14  ;;  %v448_v55 = vand.u32 2147483648, %v370_v23 }
 0x2cd   :  { %v424_v28 = vsub.f32 1.0, %v423_v22  ;;  %v1032_v29 = vmul.f32 %v986_v63, %v420_v26  ;;  %794 = vlog2.f32 %v370_v23  ;;  %v434_v63 = vor.u32 1.1754944e-38, %v433_v34 }
 0x2ce   :  { %v516_v56 = vsub.f32 %v984_v62, %v504_v44  ;;  %v446_v0 = vand.u32 2147483647, %v370_v23  ;;  %vm442_vm4 = vweird.f32 %v370_v23 }
 0x2cf   :  { %v523_v35 = vmul.f32 %v515_v31, %v1032_v29  ;;  %v425_v37 = vmul.f32 %v789_v20, %v424_v28 }
 0x2d0   :  { %vm447_vm6 = vcmp.eq.f32.partialorder %v446_v0, 8.507059e+37 }
 0x2d1   :  { %v531_v40 = vsel %vm312_vm1, %v523_v35, 0.0  ;;  %v426_v43 = vadd.f32 %v789_v20, %v425_v37 }
 0x2d2   :  { %v793_v46 = vpop.eup %792  ;;  %541 = vadd.xlane.f32.xlu0 %v531_v40 }
 0x2d3   :  { %v438_v47 = vmul.f32 %v793_v46, %v370_v23  ;;  %v372_v59 = vpop.xlane.xlu1 %371  ;;  %v430_v49 = vsel %vm429_vm0, %v789_v20, %v426_v43  ;;  %v795_v58 = vpop.eup %794  ;;  %vm443_vm3 = vweird.f32 %v793_v46 }
 0x2d4   :  { %796 = vrcp.f32 %v372_v59  ;;  %v435_v50 = vsel %vm432_vm2, %v434_v63, %v430_v49  ;;  %v506_v5 = vmul.f32 0.6931472, %v795_v58  ;;  %vm444_vm5 = vmor %vm442_vm4, %vm443_vm3  ;;  %v463_v19 = vand.u32 2147483648, %v372_v59 }
 0x2d5   :  { %v439_v52 = vsub.f32 1.0, %v438_v47  ;;  %v1039_v53 = vmul.f32 %v992_v3, %v435_v50  ;;  %798 = vlog2.f32 %v372_v59  ;;  %v449_v3 = vor.u32 1.1754944e-38, %v448_v55 }
 0x2d6   :  { %v517_v18 = vsub.f32 %v990_v2, %v506_v5  ;;  %v461_v22 = vand.u32 2147483647, %v372_v59  ;;  %vm457_vm8 = vweird.f32 %v372_v59  ;;  %vm569_vm4 = vcmp.eq.s32.totalorder %v923_v24, 8 }
 0x2d7   :  { %v524_v60 = vmul.f32 %v516_v56, %v1039_v53  ;;  %v440_v61 = vmul.f32 %v793_v46, %v439_v52 }
 0x2d8   :  { %vm462_vm10 = vcmp.eq.f32.partialorder %v461_v22, 8.507059e+37 }
 0x2d9   :  { %v532_v1 = vsel %vm312_vm1, %v524_v60, 0.0  ;;  %v441_v4 = vadd.f32 %v793_v46, %v440_v61 }
 0x2da   :  { %v797_v8 = vpop.eup %796  ;;  %543 = vadd.xlane.f32.xlu1 %v532_v1 }
 0x2db   :  { %v453_v9 = vmul.f32 %v797_v8, %v372_v59  ;;  %v374_v62 = vpop.xlane.xlu2 %373  ;;  %v445_v12 = vsel %vm444_vm5, %v793_v46, %v441_v4  ;;  %v799_v54 = vpop.eup %798  ;;  %vm458_vm7 = vweird.f32 %v797_v8  ;;  %vm578_vm5 = vcmp.eq.s32.totalorder %v923_v24, 9 }
 0x2dc   :  { %800 = vrcp.f32 %v374_v62  ;;  %v450_v13 = vsel %vm447_vm6, %v449_v3, %v445_v12  ;;  %v508_v26 = vmul.f32 0.6931472, %v799_v54  ;;  %vm459_vm9 = vmor %vm457_vm8, %vm458_vm7  ;;  %v478_v43 = vand.u32 2147483648, %v374_v62 }
 0x2dd   :  { %v454_v16 = vsub.f32 1.0, %v453_v9  ;;  %v1046_v57 = vmul.f32 %v998_v7, %v450_v13  ;;  %802 = vlog2.f32 %v374_v62  ;;  %v464_v7 = vor.u32 1.1754944e-38, %v463_v19 }
 0x2de   :  { %v518_v38 = vsub.f32 %v996_v6, %v508_v26  ;;  %v476_v63 = vand.u32 2147483647, %v374_v62  ;;  %vm472_vm12 = vweird.f32 %v374_v62  ;;  %v561_v54 = vsel %vm312_vm1, %v1018_v41, 0.0 }
 0x2df   :  { %v525_v20 = vmul.f32 %v517_v18, %v1046_v57  ;;  %v455_v21 = vmul.f32 %v797_v8, %v454_v16 }
 0x2e0   :  { %vm477_vm14 = vcmp.eq.f32.partialorder %v476_v63, 8.507059e+37 }
 0x2e1   :  { %v533_v23 = vsel %vm312_vm1, %v525_v20, 0.0  ;;  %v456_v25 = vadd.f32 %v797_v8, %v455_v21  ;;  %v562_v21 = vsel %vm312_vm1, %v1025_v51, 0.0 }
 0x2e2   :  { %v801_v28 = vpop.eup %800  ;;  %545 = vadd.xlane.f32.xlu2 %v533_v23  ;;  %v571_v23 = vsel %vm569_vm4, %v934_v30, %v562_v21  ;;  %v564_v30 = vsel %vm312_vm1, %v1039_v53, 0.0 }
 0x2e3   :  { %v468_v31 = vmul.f32 %v801_v28, %v374_v62  ;;  %v376_v2 = vpop.xlane.xlu0 %375  ;;  %v460_v32 = vsel %vm459_vm9, %v797_v8, %v456_v25  ;;  %v803_v40 = vpop.eup %802  ;;  %vm473_vm11 = vweird.f32 %v801_v28 }
 0x2e4   :  { %804 = vrcp.f32 %v376_v2  ;;  %v465_v34 = vsel %vm462_vm10, %v464_v7, %v460_v32  ;;  %v510_v49 = vmul.f32 0.6931472, %v803_v40  ;;  %vm474_vm13 = vmor %vm472_vm12, %vm473_vm11  ;;  %v493_v0 = vand.u32 2147483648, %v376_v2 }
 0x2e5   :  { %v469_v35 = vsub.f32 1.0, %v468_v31  ;;  %v1053_v37 = vmul.f32 %v1004_v11, %v465_v34  ;;  %806 = vlog2.f32 %v376_v2  ;;  %v479_v11 = vor.u32 1.1754944e-38, %v478_v43 }
 0x2e6   :  { %v519_v60 = vsub.f32 %v1002_v10, %v510_v49  ;;  %v491_v5 = vand.u32 2147483647, %v376_v2  ;;  %vm487_vm0 = vweird.f32 %v376_v2  ;;  %v494_v62 = vor.u32 1.1754944e-38, %v493_v0 }
 0x2e7   :  { %v526_v44 = vmul.f32 %v518_v38, %v1053_v37  ;;  %v470_v46 = vmul.f32 %v801_v28, %v469_v35 }
 0x2e8   :  { %vm492_vm3 = vcmp.eq.f32.partialorder %v491_v5, 8.507059e+37 }
 0x2e9   :  { %v534_v47 = vsel %vm312_vm1, %v526_v44, 0.0  ;;  %v471_v59 = vadd.f32 %v801_v28, %v470_v46 }
 0x2ea   :  { %v805_v50 = vpop.eup %804  ;;  %547 = vadd.xlane.f32.xlu0 %v534_v47 }
 0x2eb   :  { %v483_v52 = vmul.f32 %v805_v50, %v376_v2  ;;  %v475_v6 = vsel %vm474_vm13, %v801_v28, %v471_v59  ;;  %v807_v61 = vpop.eup %806  ;;  %vm488_vm15 = vweird.f32 %v805_v50 }
 0x2ec   :  { %v480_v56 = vsel %vm477_vm14, %v479_v11, %v475_v6  ;;  %v512_v9 = vmul.f32 0.6931472, %v807_v61  ;;  %vm489_vm2 = vmor %vm487_vm0, %vm488_vm15 }
 0x2ed   :  { %v484_v58 = vsub.f32 1.0, %v483_v52  ;;  %v481_v55 = vmul.f32 %v1010_v15, %v480_v56 }
 0x2ee   :  { %v520_v13 = vsub.f32 %v1008_v14, %v512_v9 }
 0x2ef   :  { %v527_v1 = vmul.f32 %v519_v60, %v481_v55  ;;  %v485_v4 = vmul.f32 %v805_v50, %v484_v58 }
 0x2f1   :  { %v535_v8 = vsel %vm312_vm1, %v527_v1, 0.0  ;;  %v486_v3 = vadd.f32 %v805_v50, %v485_v4 }
 0x2f2   :  { %549 = vadd.xlane.f32.xlu1 %v535_v8 }
 0x2f3   :  { %v490_v12 = vsel %vm489_vm2, %v805_v50, %v486_v3 }
 0x2f4   :  { %v495_v15 = vsel %vm492_vm3, %v494_v62, %v490_v12 }
 0x2f5   :  { %v496_v10 = vmul.f32 %v1014_v17, %v495_v15  ;;  %v570_v17 = vsel %vm569_vm4, %v929_v27, %v561_v54  ;;  %v563_v27 = vsel %vm312_vm1, %v1032_v29, 0.0  ;;  %v573_v29 = vsel %vm569_vm4, %v944_v36, %v564_v30 }
 0x2f6   :  { %v572_v51 = vsel %vm569_vm4, %v939_v33, %v563_v27  ;;  %v565_v33 = vsel %vm312_vm1, %v1046_v57, 0.0  ;;  %v566_v36 = vsel %vm312_vm1, %v1053_v37, 0.0 }
 0x2f7   :  { %v528_v16 = vmul.f32 %v520_v13, %v496_v10  ;;  %v574_v53 = vsel %vm569_vm4, %v949_v39, %v565_v33  ;;  %v575_v57 = vsel %vm569_vm4, %v954_v42, %v566_v36  ;;  %v567_v39 = vsel %vm312_vm1, %v481_v55, 0.0 }
 0x2f8   :  { %v576_v47 = vsel %vm569_vm4, %v959_v45, %v567_v39  ;;  %v568_v42 = vsel %vm312_vm1, %v496_v10, 0.0 }
 0x2f9   :  { %v536_v18 = vsel %vm312_vm1, %v528_v16, 0.0  ;;  %v577_v45 = vsel %vm569_vm4, %v964_v48, %v568_v42 }
 0x2fa   :  { %551 = vadd.xlane.f32.xlu2 %v536_v18 }
 0x329   :  { %v538_v19 = vpop.xlane.xlu1 %537 }
 0x32a   :  { %v553_v20 = vsub.f32 0.0, %v538_v19 }
 0x32c   :  { %v579_v14 = vsel %vm578_vm5, %v553_v20, %v570_v17 }
 0x32d   :  { %587 = vst [vmem:[#allocation5] sm:$0xff] %v579_v14 }
 0x331   :  { %v540_v22 = vpop.xlane.xlu2 %539 }
 0x332   :  { %v554_v41 = vsub.f32 0.0, %v540_v22 }
 0x334   :  { %v580_v25 = vsel %vm578_vm5, %v554_v41, %v571_v23 }
 0x335   :  { %588 = vst [vmem:[#allocation5 + $0x8] sm:$0xff] %v580_v25 }
 0x345   :  { %v542_v26 = vpop.xlane.xlu0 %541 }
 0x346   :  { %v555_v28 = vsub.f32 0.0, %v542_v26 }
 0x348   :  { %v581_v7 = vsel %vm578_vm5, %v555_v28, %v572_v51 }
 0x349   :  { %589 = vst [vmem:[#allocation5 + $0x10] sm:$0xff] %v581_v7 }
 0x34d   :  { %v544_v31 = vpop.xlane.xlu1 %543 }
 0x34e   :  { %v556_v2 = vsub.f32 0.0, %v544_v31 }
 0x350   :  { %v582_v32 = vsel %vm578_vm5, %v556_v2, %v573_v29 }
 0x351   :  { %590 = vst [vmem:[#allocation5 + $0x18] sm:$0xff] %v582_v32 }
 0x355   :  { %v546_v34 = vpop.xlane.xlu2 %545 }
 0x356   :  { %v557_v35 = vsub.f32 0.0, %v546_v34 }
 0x358   :  { %v583_v38 = vsel %vm578_vm5, %v557_v35, %v574_v53 }
 0x359   :  { %591 = vst [vmem:[#allocation5 + $0x20] sm:$0xff] %v583_v38 }
 0x35d   :  { %v548_v40 = vpop.xlane.xlu0 %547 }
 0x35e   :  { %v558_v43 = vsub.f32 0.0, %v548_v40 }
 0x360   :  { %v584_v44 = vsel %vm578_vm5, %v558_v43, %v575_v57 }
 0x361   :  { %592 = vst [vmem:[#allocation5 + $0x28] sm:$0xff] %v584_v44 }
 0x365   :  { %v550_v46 = vpop.xlane.xlu1 %549 }
 0x366   :  { %v559_v63 = vsub.f32 0.0, %v550_v46 }
 0x368   :  { %v585_v37 = vsel %vm578_vm5, %v559_v63, %v576_v47 }
 0x369   :  { %593 = vst [vmem:[#allocation5 + $0x30] sm:$0xff] %v585_v37 }
 0x36d   :  { %v552_v59 = vpop.xlane.xlu2 %551 }
 0x36e   :  { %v560_v49 = vsub.f32 0.0, %v552_v59 }
 0x370   :  { %v586_v50 = vsel %vm578_vm5, %v560_v49, %v577_v45 }
 0x371   :  { %594 = vst [vmem:[#allocation5 + $0x38] sm:$0xff] %v586_v50 }
 0x372   :  { %607 = dma.vmem_to_hbm [thread:$0]  %s600_s12, 1024, %s602_s15, [#allocation4], %s864_s16, %s864_s16, %s865_s17  }
 0x373   :  { %858 = dma.done.wait [#allocation4], 1024  }
 0x374   :  { %859 = vsyncadd [#allocation4], 4294966272 }
 0x375   :  { %612 = vsyncpa [#allocation3], 1 }
 0x376   :  { %613 = vsyncpa [#allocation4], 1 }

</bundles_post_ra>
